<compile_context>
chip_gen: v5e
topology: v5e:2x2
jax: 0.10.0
libtpu: 0.0.40
codegen_flags: <defaults>
</compile_context>

<pallas_src>
import functools
import math

import jax
import jax.numpy as jnp
from jax.experimental import pallas as pl
from jax.experimental.pallas import tpu as pltpu

EPS = 1e-6  # default eps of nn.PairwiseDistance


def _som_bmu_kernel(x_ref, stats_ref, dmin_ref, idx_ref, *, sqrt_n):
    """Per-batch-tile BMU search.

    q[b, d]   = (x[b,d] - m[d])^2 + c[d]          (= dist^2 / N)
    dmin[b]   = sqrt(N) * sqrt(min_d q[b, d])
    idx[b]    = first argmin_d q[b, d]            (torch.min tie-breaking)
    """
    x = x_ref[...].astype(jnp.float32)            # (tile_b, D), upcast in-kernel
    m = stats_ref[0:1, :]                          # (1, D): mean_n w[d,:] - eps
    c = stats_ref[1:2, :]                          # (1, D): var_n  w[d,:]  (>= 0)

    t = x - m
    q = t * t + c                                  # (tile_b, D) elementwise

    qmin = jnp.min(q, axis=1, keepdims=True)       # (tile_b, 1)
    d = q.shape[1]
    ids = jax.lax.broadcasted_iota(jnp.int32, q.shape, 1)
    # first index achieving the minimum
    idx = jnp.min(jnp.where(q <= qmin, ids, d), axis=1, keepdims=True)

    dmin = sqrt_n * jnp.sqrt(jnp.maximum(qmin, 0.0))   # sqrt only on row minima

    # Lane-dense stores: relayout the (tile_b, 1) columns to (1, 1, tile_b) rows.
    tb = x.shape[0]
    dmin_ref[...] = dmin.reshape(1, 1, tb)
    idx_ref[...] = idx.reshape(1, 1, tb).astype(jnp.int32)


def _pick_tile_b(batch, feat, x_dtype):
    """Pick the batch-tile size.

    Per-row VMEM footprint: double-buffered x tile (native dtype) plus ~5 f32
    (tile_b, D) temporaries (t, q, iota, mask/where, reduction staging).
    Budget 16 MiB keeps us under the explicit 32 MiB scoped-VMEM limit on all
    of v5e/v6e/v7x.  When B >= 16, cap tile_b at ceil(B/2) so the "parallel"
    grid axis has >= 2 steps and shards across both v7x TensorCores.
    """
    x_bytes = jnp.dtype(x_dtype).itemsize
    bytes_per_row = 2 * feat * x_bytes + 5 * feat * 4
    budget = 16 << 20
    max_rows = max(budget // bytes_per_row, 8)
    tile_b = min(batch, 1024, max_rows)
    if batch >= 16:
        tile_b = min(tile_b, pl.cdiv(batch, 2))
    if tile_b < batch:
        tile_b = max((tile_b // 8) * 8, 8)  # (8, 128) sublane constraint
    num_tiles = pl.cdiv(batch, tile_b)
    return int(tile_b), int(num_tiles)


def som_forward(x, weight, locations, eps=EPS):
    """Forward pass of SOM. Returns (bmu_locations (B, 1, 2), loss scalar)."""
    B = x.shape[0]
    x2 = x.reshape(B, -1)                          # input.view(B, -1); native dtype
    D = x2.shape[1]
    w = weight.astype(jnp.float32)
    N = w.shape[1]

    # torch's argmin runs over the feature axis [0, D) but indexes locations
    # of shape (N, 2); if D > N torch can raise at runtime while JAX would
    # silently clamp the gather — fail loudly instead.
    if D > locations.shape[0]:
        raise ValueError(
            f"flattened feature size D={D} exceeds number of SOM nodes "
            f"N={locations.shape[0]}; torch would raise on locations[argmin]."
        )

    # Hoisted node statistics (one pass over the (D, N) weight, outside the
    # hot path).  Shifted form: dist^2 = N * ((x + eps - mean)^2 + var).
    mean = jnp.mean(w, axis=1)                                     # (D,)
    var = jnp.mean(jnp.square(w - mean[:, None]), axis=1)          # (D,)
    stats = jnp.stack([mean - eps, jnp.maximum(var, 0.0)], axis=0)  # (2, D) f32

    tile_b, num_tiles = _pick_tile_b(B, D, x2.dtype)

    dmin, idx = pl.pallas_call(
        functools.partial(_som_bmu_kernel, sqrt_n=math.sqrt(float(N))),
        out_shape=(
            jax.ShapeDtypeStruct((num_tiles, 1, tile_b), jnp.float32),
            jax.ShapeDtypeStruct((num_tiles, 1, tile_b), jnp.int32),
        ),
        grid=(num_tiles,),
        in_specs=[
            pl.BlockSpec((tile_b, D), lambda i: (i, 0)),
            pl.BlockSpec((2, D), lambda i: (0, 0)),
        ],
        out_specs=(
            pl.BlockSpec((1, 1, tile_b), lambda i: (i, 0, 0)),
            pl.BlockSpec((1, 1, tile_b), lambda i: (i, 0, 0)),
        ),
        compiler_params=pltpu.CompilerParams(
            dimension_semantics=("parallel",),
            vmem_limit_bytes=32 * 1024 * 1024,
        ),
    )(x2, stats)

    # Flatten the per-tile rows and drop padded tail rows (ragged last tile).
    dmin = dmin.reshape(-1)[:B]                    # (B,)
    idx = idx.reshape(-1)[:B]                      # (B,)

    # Glue ops, same as torch:
    #   bmu_locations = self.locations[bmu_indexes]   -> (B, 1, 2)
    #   loss = losses.sum() / batch_size
    bmu_locations = locations[idx][:, None, :]     # (B, 1, 2)
    loss = jnp.sum(dmin) / B
    return bmu_locations, loss


def make_som_params(key, input_size, out_size=(10, 10)):
    """Deterministic init matching SOM.__init__ shapes."""
    n_nodes = out_size[0] * out_size[1]
    weight = jax.random.normal(key, (input_size, n_nodes), dtype=jnp.float32)
    # get_map_index(): for x in range(out_size[0]) for y in range(out_size[0])
    # (faithful to the torch code, including its non-square-map quirk).
    locs = [(float(xx), float(yy))
            for xx in range(out_size[0]) for yy in range(out_size[0])]
    locations = jnp.asarray(locs, dtype=jnp.float32)      # (out0*out0, 2)
    return weight, locations


if __name__ == "__main__":
    input_size = 32
    out_size = (10, 10)
    batch = 2

    key = jax.random.PRNGKey(0)
    k_w, k_x = jax.random.split(key)

    weight, locations = make_som_params(k_w, input_size, out_size)
    x = jax.random.normal(k_x, (batch, input_size), dtype=jnp.float32)

    bmu_locations, loss = som_forward(x, weight, locations)
    bmu_locations = jax.block_until_ready(bmu_locations)
    loss = jax.block_until_ready(loss)

    # pure-JAX reference: direct PairwiseDistance broadcast (no expansion)
    diff = (x + EPS)[:, :, None] - weight[None, :, :]
    dist_ref = jnp.sqrt(jnp.sum(diff * diff, axis=-1))
    dmin_ref = jnp.min(dist_ref, axis=1)
    idx_ref = jnp.argmin(dist_ref, axis=1)
    loc_ref = locations[idx_ref][:, None, :]
    loss_ref = jnp.sum(dmin_ref) / batch

    assert bmu_locations.shape == (batch, 1, 2)
    assert jnp.allclose(bmu_locations, loc_ref)
    assert jnp.allclose(loss, loss_ref, rtol=1e-4, atol=1e-4)

    print("KERNEL_OK")
</pallas_src>

<mosaic_0001>
module attributes {stable_mosaic.version = 11 : i64} {
  func.func @_som_bmu_kernel(%arg0: i32, %arg1: memref<2x32xf32, #tpu.memory_space<vmem>>, %arg2: memref<2x32xf32, #tpu.memory_space<vmem>>, %arg3: memref<1x1x2xf32, #tpu.memory_space<vmem>>, %arg4: memref<1x1x2xi32, #tpu.memory_space<vmem>>) attributes {dimension_semantics = [#tpu.dimension_semantics<parallel>], iteration_bounds = array<i64: 1>, scalar_prefetch = 0 : i64, scratch_operands = 0 : i64, tpu.core_type = #tpu.core_type<tc>, window_params = [{transform_indices = @transform_0, window_bounds = array<i64: 2, 32>}, {pipeline_mode = #tpu.pipeline_mode<synchronous>, transform_indices = @transform_1, window_bounds = array<i64: 2, 32>}, {transform_indices = @transform_2, window_bounds = array<i64: 1, 1, 2>}, {transform_indices = @transform_3, window_bounds = array<i64: 1, 1, 2>}]} {
    %c0 = arith.constant 0 : index
    %c0_0 = arith.constant 0 : index
    %0 = vector.load %arg1[%c0, %c0_0] : memref<2x32xf32, #tpu.memory_space<vmem>>, vector<2x32xf32>
    %c0_1 = arith.constant 0 : index
    %c0_2 = arith.constant 0 : index
    %1 = vector.load %arg2[%c0_1, %c0_2] : memref<2x32xf32, #tpu.memory_space<vmem>>, vector<1x32xf32>
    %c1 = arith.constant 1 : index
    %c0_3 = arith.constant 0 : index
    %2 = vector.load %arg2[%c1, %c0_3] : memref<2x32xf32, #tpu.memory_space<vmem>>, vector<1x32xf32>
    %3 = vector.broadcast %1 : vector<1x32xf32> to vector<2x32xf32>
    %4 = arith.subf %0, %3 : vector<2x32xf32>
    %5 = arith.mulf %4, %4 : vector<2x32xf32>
    %6 = vector.broadcast %2 : vector<1x32xf32> to vector<2x32xf32>
    %7 = arith.addf %5, %6 : vector<2x32xf32>
    %cst = arith.constant dense<0x7F800000> : vector<2xf32>
    %8 = vector.multi_reduction <minimumf>, %7, %cst [1] : vector<2x32xf32> to vector<2xf32>
    %9 = vector.shape_cast %8 : vector<2xf32> to vector<2x1xf32>
    %10 = tpu.iota {dimensions = array<i32: 1>} : vector<2x32xi32>
    %11 = vector.broadcast %9 : vector<2x1xf32> to vector<2x32xf32>
    %12 = arith.cmpf ole, %7, %11 : vector<2x32xf32>
    %c32_i32 = arith.constant 32 : i32
    %13 = vector.broadcast %c32_i32 : i32 to vector<2x32xi32>
    %14 = arith.select %12, %10, %13 : vector<2x32xi1>, vector<2x32xi32>
    %cst_4 = arith.constant dense<2147483647> : vector<2xi32>
    %15 = vector.multi_reduction <minsi>, %14, %cst_4 [1] : vector<2x32xi32> to vector<2xi32>
    %16 = vector.shape_cast %15 : vector<2xi32> to vector<2x1xi32>
    %cst_5 = arith.constant 0.000000e+00 : f32
    %17 = vector.broadcast %cst_5 : f32 to vector<2x1xf32>
    %18 = arith.maximumf %9, %17 : vector<2x1xf32>
    %19 = math.sqrt %18 : vector<2x1xf32>
    %cst_6 = arith.constant 1.000000e+01 : f32
    %20 = vector.broadcast %cst_6 : f32 to vector<2x1xf32>
    %21 = arith.mulf %20, %19 : vector<2x1xf32>
    %22 = vector.shape_cast %21 : vector<2x1xf32> to vector<1x1x2xf32>
    %c0_7 = arith.constant 0 : index
    %c0_8 = arith.constant 0 : index
    %c0_9 = arith.constant 0 : index
    %23 = vector.load %arg3[%c0_7, %c0_8, %c0_9] : memref<1x1x2xf32, #tpu.memory_space<vmem>>, vector<1x1x2xf32>
    tpu.vector_store %arg3[%c0_7, %c0_8, %c0_9], %22 {strides = array<i32>} : memref<1x1x2xf32, #tpu.memory_space<vmem>>, vector<1x1x2xf32>,
    %24 = vector.shape_cast %16 : vector<2x1xi32> to vector<1x1x2xi32>
    %c0_10 = arith.constant 0 : index
    %c0_11 = arith.constant 0 : index
    %c0_12 = arith.constant 0 : index
    %25 = vector.load %arg4[%c0_10, %c0_11, %c0_12] : memref<1x1x2xi32, #tpu.memory_space<vmem>>, vector<1x1x2xi32>
    tpu.vector_store %arg4[%c0_10, %c0_11, %c0_12], %24 {strides = array<i32>} : memref<1x1x2xi32, #tpu.memory_space<vmem>>, vector<1x1x2xi32>,
    return
  }
  func.func @transform_0(%arg0: i32) -> (i32, i32) {
    %c0_i32 = arith.constant 0 : i32
    %c0_i32_0 = arith.constant 0 : i32
    return %arg0, %c0_i32 : i32, i32
  }
  func.func @transform_1(%arg0: i32) -> (i32, i32) {
    %c0_i32 = arith.constant 0 : i32
    %c0_i32_0 = arith.constant 0 : i32
    %c0_i32_1 = arith.constant 0 : i32
    return %c0_i32, %c0_i32_0 : i32, i32
  }
  func.func @transform_2(%arg0: i32) -> (i32, i32, i32) {
    %c0_i32 = arith.constant 0 : i32
    %c0_i32_0 = arith.constant 0 : i32
    %c0_i32_1 = arith.constant 0 : i32
    return %arg0, %c0_i32, %c0_i32_0 : i32, i32, i32
  }
  func.func @transform_3(%arg0: i32) -> (i32, i32, i32) {
    %c0_i32 = arith.constant 0 : i32
    %c0_i32_0 = arith.constant 0 : i32
    %c0_i32_1 = arith.constant 0 : i32
    return %arg0, %c0_i32, %c0_i32_0 : i32, i32, i32
  }
}

</mosaic_0001>

<bundles_post_ra>
// kernel: tpu_custom_call.1
= control target key start
LH: loop header
LB: loop body
LE: loop exit
PB: predicated region body
PF: predicated region fallthrough
CT: control target
= control target key end

     0   :  { %9 = vsyncpa [#allocation3], 0  ;;  %s279_s0 = inlined_call_operand.hbm [shape: f32[2,32], index: 0, kind: input, shape index: {}]   ;;  %s280_s1 = inlined_call_operand.hbm [shape: f32[2,32], index: 1, kind: input, shape index: {}]   ;;  %s281_s2 = inlined_call_operand.hbm [shape: f32[1,1,2], index: 2, kind: output, shape index: {0}]   ;;  %s282_s3 = inlined_call_operand.hbm [shape: s32[1,1,2], index: 3, kind: output, shape index: {1}]  }
   0x1   :  { %10 = vsyncpa [#allocation6], 0 }
   0x2   :  { %11 = vsyncpa [#allocation4], 0 }
   0x3   :  { %12 = vsyncpa [#allocation9], 0  ;;  %s18_s14 = sshll.u32 %s279_s0, 4  ;;  %s241_s15 = smov [#allocation2]   ;;  %s19_s14 = int_to_ptr.hbm [resolvable:$true] %s18_s14 }
   0x4   :  { %s20_s16 = sshll.u32 %s241_s15, 4  ;;  %s29_s19 = sshll.u32 %s280_s1, 4  ;;  %s21_s16 = int_to_ptr.vmem [resolvable:$true] %s20_s16  ;;  %s30_s19 = int_to_ptr.hbm [resolvable:$true] %s29_s19 }
   0x5   :  { %23 = dma.hbm_to_vmem [thread:$0]  %s19_s14, 32, %s21_s16, [#allocation3]  }
   0x6   :  { %s242_s20 = smov [#allocation5]  }
   0x7   :  { %s31_s21 = sshll.u32 %s242_s20, 4  ;;  %s32_s21 = int_to_ptr.vmem [resolvable:$true] %s31_s21 }
   0x8   :  { %34 = dma.hbm_to_vmem [thread:$0]  %s30_s19, 32, %s32_s21, [#allocation6]  }
   0x9   :  { %233 = dma.done.wait [#allocation3], 32  }
   0xa   :  { %234 = vsyncadd [#allocation3], 4294967264 }
   0xb   :  { %235 = dma.done.wait [#allocation6], 32  }
   0xc   :  { %236 = vsyncadd [#allocation6], 4294967264  ;;  %v43_v0 = vld [vmem:[#allocation2] sm:$0x3]  ;;  %v133_v1 = vld [vmem:[#allocation5] ss:$0 sm:$0xff]  ;;  %v55_v7 = vlaneseq }
   0xd   :  { %v47_v2 = vsub.f32 %v43_v0, %v133_v1  ;;  %v134_v3 = vld [vmem:[#allocation5 + $0x1] ss:$0 sm:$0xff]  ;;  %vm51_vm0 = vcmask 254976   ;;  %vm91_vm4 = vcmask 8192   ;;  %s102_s22 = sshll.u32 %s281_s2, 4  ;;  %s243_s23 = smov [#allocation7]   ;;  %s103_s22 = int_to_ptr.hbm [resolvable:$true] %s102_s22 }
   0xe   :  { %v56_v8 = vand.u32 127, %v55_v7  ;;  %s100_s24 = sshll.u32 %s243_s23, 4  ;;  %s244_s25 = smov [#allocation8]   ;;  %s101_s24 = int_to_ptr.vmem [resolvable:$true] %s100_s24 }
   0xf   :  { %v48_v4 = vmul.f32 %v47_v2, %v47_v2  ;;  %s111_s26 = sshll.u32 %s244_s25, 4  ;;  %s113_s2 = sshll.u32 %s282_s3, 4  ;;  %s112_s26 = int_to_ptr.vmem [resolvable:$true] %s111_s26  ;;  %s114_s2 = int_to_ptr.hbm [resolvable:$true] %s113_s2 }
  0x11   :  { %v50_v5 = vadd.f32 %v134_v3, %v48_v4 }
  0x13   :  { %v52_v6 = vsel %vm51_vm0, %v50_v5, inf }
  0x14   :  { %53 = vmin.xlane.f32.xlu0 %v52_v6 }
  0x87   :  { %v54_v9 = vpop.xlane.xlu0 %53 }
  0x88   :  { %vm57_vm1 = vcmp.le.f32.partialorder %v50_v5, %v54_v9  ;;  %v74_v10 = vmax.f32 %v54_v9, 0.0 }
  0x89   :  { %v58_v11 = vsel %vm57_vm1, %v56_v8, 32 }
  0x8a   :  { %135 = vrsqrt.f32 %v74_v10  ;;  %v59_v12 = vsel %vm51_vm0, %v58_v11, 2147483647  ;;  %vm82_vm2 = vcmp.eq.f32.partialorder %v74_v10, inf  ;;  %v85_v22 = vand.u32 2147483648, %v74_v10 }
  0x8b   :  { %v61_v13 = vshra.s32 %v59_v12, 16  ;;  %vm84_vm3 = vcmp.eq.f32.partialorder %v74_v10, 0.0  ;;  %v60_v27 = vand.u32 65535, %v59_v12 }
  0x8d   :  { %v63_v14 = vcvt.s32.f32 %v61_v13  ;;  %v62_v29 = vcvt.s32.f32 %v60_v27 }
  0x8f   :  { %64 = vmin.xlane.f32.xlu0 %v63_v14 }
  0x90   :  { %v136_v15 = vpop.eup %135 }
  0x91   :  { %v76_v16 = vmul.f32 %v136_v15, %v74_v10 }
  0x93   :  { %v77_v17 = vmul.f32 %v136_v15, %v76_v16 }
  0x95   :  { %v78_v18 = vmul.f32 0.5, %v77_v17 }
  0x97   :  { %v79_v19 = vsub.f32 1.5, %v78_v18 }
  0x99   :  { %v80_v20 = vmul.f32 %v136_v15, %v79_v19 }
  0x9b   :  { %v81_v21 = vmul.f32 %v80_v20, %v74_v10 }
  0x9d   :  { %v83_v23 = vsel %vm82_vm2, %v74_v10, %v81_v21 }
  0x9e   :  { %v86_v24 = vsel %vm84_vm3, %v85_v22, %v83_v23 }
  0x9f   :  { %v87_v25 = vmul.f32 10.0, %v86_v24 }
  0xa1   :  { %v89_v26 = vperm.slane %v87_v25, %v56_v8 }
  0xa3   :  { %92 = vst.msk [vmem:[#allocation7] sm:$0x1] %vm91_vm4, %v89_v26 }
  0xa4   :  { %105 = dma.vmem_to_hbm [thread:$0]  %s101_s24, 16, %s103_s22, [#allocation4]  }
 0x102   :  { %v65_v28 = vpop.xlane.xlu0 %64 }
 0x103   :  { %vm66_vm5 = vcmp.eq.f32.partialorder %v63_v14, %v65_v28  ;;  %v71_v31 = vcvt.f32.s32 %v65_v28 }
 0x104   :  { %v67_v30 = vsel %vm66_vm5, %v62_v29, inf }
 0x105   :  { %68 = vmin.xlane.f32.xlu1 %v67_v30  ;;  %v72_v33 = vshll.u32 %v71_v31, 16 }
 0x178   :  { %v69_v32 = vpop.xlane.xlu1 %68 }
 0x179   :  { %v70_v34 = vcvt.f32.s32 %v69_v32 }
 0x17b   :  { %v73_v35 = vadd.s32 %v72_v33, %v70_v34 }
 0x17d   :  { %v93_v36 = vperm.slane %v73_v35, %v56_v8 }
 0x17f   :  { %94 = vst.msk [vmem:[#allocation8] sm:$0x1] %vm91_vm4, %v93_v36 }
 0x180   :  { %116 = dma.vmem_to_hbm [thread:$0]  %s112_s26, 16, %s114_s2, [#allocation9]  }
 0x181   :  { %237 = dma.done.wait [#allocation4], 16  }
 0x182   :  { %238 = vsyncadd [#allocation4], 4294967280 }
 0x183   :  { %239 = dma.done.wait [#allocation9], 16  }
 0x184   :  { %240 = vsyncadd [#allocation9], 4294967280 }
 0x185   :  { %125 = vsyncpa [#allocation3], 1 }
 0x186   :  { %126 = vsyncpa [#allocation6], 1 }
 0x187   :  { %127 = vsyncpa [#allocation4], 1 }
 0x188   :  { %128 = vsyncpa [#allocation9], 1 }

</bundles_post_ra>
